<compile_context>
chip_gen: v7x
topology: tpu7x:2x2x1
jax: 0.10.0
libtpu: 0.0.40
codegen_flags: <defaults>
</compile_context>

<pallas_src>
import functools

import jax
import jax.numpy as jnp
from jax.experimental import pallas as pl
from jax.experimental.pallas import tpu as pltpu

D_CLIP = 768      # CLIP image-embedding width expected by the projection head
D_HID = 384       # projection head hidden width
PATCH = 8         # patch size of the stand-in encoder
BN_EPS = 1e-5     # torch.nn.BatchNorm1d default eps


def _round_up(x, m):
    return ((x + m - 1) // m) * m


def mh_safety_kernel(x_ref, wf_ref, bias_ref, b2_ref, out_ref):
    """Fused projection head over one batch tile.

    x_ref   : [TB, K]   bf16  mean-pooled image patches (stand-in encoder input)
    wf_ref  : [K, 384]  bf16  w_embed @ w1 (encoder folded into Linear(768,384))
    bias_ref: [2, 384]  f32   row 0 = Linear(768,384) bias, row 1 = BN-folded w2 row
    b2_ref  : [1]       f32   (SMEM) BN-folded Linear(384,1) bias
    out_ref : [1, TB]   f32   sigmoid probabilities (lane-dense row)
    """
    # Encoder + Linear(768,384) folded: one MXU pass, f32 accumulation.
    h = jnp.dot(x_ref[...], wf_ref[...], preferred_element_type=jnp.float32)
    # Bias + ReLU on the VPU in f32 (v5e has no bf16 VPU path).
    h = jnp.maximum(h + bias_ref[0:1, :], 0.0)
    # TODO(synk): Dropout(0.5) is identity in eval mode; train-mode masking not implemented.
    # BatchNorm1d (eval) is folded into bias_ref row 1 / b2 outside the kernel.
    # Linear(384,1) as [1,384] x [TB,384]^T -> lane-dense [1, TB] logits row
    # (avoids per-row XLU lane reduces and masked [TB,1] column stores).
    logits = jax.lax.dot_general(
        bias_ref[1:2, :], h,
        dimension_numbers=(((1,), (1,)), ((), ())),
        preferred_element_type=jnp.float32,
    )
    # Sigmoid on the EUP; store the whole probability row unmasked on lanes.
    out_ref[...] = jax.nn.sigmoid(logits + b2_ref[0])


def init_params(key, patch_dim):
    """Deterministic synthetic parameters (shapes from the module __init__)."""
    ks = jax.random.split(key, 6)
    scale = 0.02
    return {
        # TODO(synk): open_clip pretrained encode_image cannot be loaded in-script;
        # a deterministic linear patch-embed + mean-pool stand-in is used instead.
        "w_embed": scale * jax.random.normal(ks[0], (patch_dim, D_CLIP), jnp.float32),
        # projection head
        "w1": scale * jax.random.normal(ks[1], (D_CLIP, D_HID), jnp.float32),
        "b1": scale * jax.random.normal(ks[2], (D_HID,), jnp.float32),
        "bn_gamma": jnp.ones((D_HID,), jnp.float32),
        "bn_beta": jnp.zeros((D_HID,), jnp.float32),
        "bn_mean": scale * jax.random.normal(ks[3], (D_HID,), jnp.float32),
        "bn_var": jnp.abs(jax.random.normal(ks[4], (D_HID,), jnp.float32)) + 0.5,
        "w2": scale * jax.random.normal(ks[5], (D_HID, 1), jnp.float32),
        "b2": jnp.zeros((1,), jnp.float32),
    }


@functools.partial(jax.jit, static_argnames=("tb",))
def mh_safety_forward(x_nchw, params, tb=512):
    """x_nchw: [B, C, H, W] float images (PyTorch NCHW). Returns [B, 1] probs."""
    B, C, H, W = x_nchw.shape
    assert H % PATCH == 0 and W % PATCH == 0
    assert tb % 128 == 0

    # --- stand-in encode_image preprocessing --------------------------------
    # Mean-pool over patch-grid positions + bf16 cast in one fused expression
    # (under jit this is one producer fusion: no extra HBM round trips).
    x_bf16 = (
        x_nchw.reshape(B, C, H // PATCH, PATCH, W // PATCH, PATCH)
        .mean(axis=(2, 4))
        .reshape(B, C * PATCH * PATCH)
        .astype(jnp.bfloat16)
    )
    patch_dim = x_bf16.shape[1]

    # --- offline weight folding (static wrt the batch) -----------------------
    # Encoder (linear stand-in) folded into Linear(768,384) — composed in f32,
    # rounded to bf16 once for the MXU operand.
    w_fused = params["w_embed"] @ params["w1"]                        # [patch_dim, 384]
    # Eval-mode BatchNorm1d folded into Linear(384,1).
    bn_scale = params["bn_gamma"] / jnp.sqrt(params["bn_var"] + BN_EPS)
    bn_shift = params["bn_beta"] - params["bn_mean"] * bn_scale
    w2_row = (bn_scale * params["w2"][:, 0]).astype(jnp.float32)      # [384]
    b2_fold = (bn_shift @ params["w2"] + params["b2"]).reshape(1)     # [1] f32 (SMEM)
    bias_block = jnp.stack(
        [params["b1"].astype(jnp.float32), w2_row], axis=0)           # [2, 384] f32
    wf_bf16 = w_fused.astype(jnp.bfloat16)

    # --- batch tiling ---------------------------------------------------------
    # Tile rows: multiple of 128 (lane-dense output row + clean bf16 tiles),
    # capped by the padded batch so tiny batches stay one small tile, and
    # capped at half the padded batch so the grid has >= 2 steps and
    # ("parallel",) can shard it across v7x's two TensorCores.
    b_min = _round_up(B, 128)
    tb_eff = min(tb, b_min)
    if b_min > 128:
        tb_eff = min(tb_eff, _round_up(pl.cdiv(b_min, 2), 128))
    b_pad = _round_up(B, tb_eff)
    if b_pad != B:
        x_bf16 = jnp.pad(x_bf16, ((0, b_pad - B), (0, 0)))
    num_tiles = b_pad // tb_eff

    out_rows = pl.pallas_call(
        mh_safety_kernel,
        out_shape=jax.ShapeDtypeStruct((num_tiles, tb_eff), jnp.float32),
        grid=(num_tiles,),
        in_specs=[
            # activation tile: marches over the batch, double-buffered by Pallas
            pl.BlockSpec((tb_eff, patch_dim), lambda i: (i, 0)),
            # weights/biases: constant block index -> DMA'd once, VMEM-resident
            # TODO(synk): pipeline_mode=pl.Buffered(1) would halve their VMEM
            # footprint (negligible at ~300 KiB today), skipped for portability.
            pl.BlockSpec((patch_dim, D_HID), lambda i: (0, 0)),
            pl.BlockSpec((2, D_HID), lambda i: (0, 0)),
            # scalar b2 lives in SMEM (no per-step VMEM tile / DMA descriptor)
            pl.BlockSpec(memory_space=pltpu.MemorySpace.SMEM),
        ],
        # lane-dense output: one [1, TB] probability row per grid step
        out_specs=pl.BlockSpec((1, tb_eff), lambda i: (i, 0)),
        compiler_params=pltpu.CompilerParams(
            # batch axis is independent -> shard across TensorCores on v7x
            dimension_semantics=("parallel",)
        ),
    )(x_bf16, wf_bf16, bias_block, b2_fold)

    # [num_tiles, TB] rows -> the [B, 1] column the PyTorch module returns.
    return out_rows.reshape(b_pad, 1)[:B]


if __name__ == "__main__":
    key = jax.random.PRNGKey(0)
    k_img, k_par = jax.random.split(key)

    B, C, H, W = 2, 3, 16, 16                     # small NCHW images
    x = jax.random.normal(k_img, (B, C, H, W), jnp.float32)
    params = init_params(k_par, patch_dim=C * PATCH * PATCH)

    out = mh_safety_forward(x, params)
    out = jax.block_until_ready(out)
    assert out.shape == (B, 1) and out.dtype == jnp.float32
    assert bool(jnp.all((out >= 0.0) & (out <= 1.0)))
    print("KERNEL_OK")
</pallas_src>

<mosaic_0001>
module attributes {stable_mosaic.version = 11 : i64} {
  func.func @mh_safety_kernel(%arg0: i32, %arg1: memref<128x192xbf16, #tpu.memory_space<vmem>>, %arg2: memref<192x384xbf16, #tpu.memory_space<vmem>>, %arg3: memref<2x384xf32, #tpu.memory_space<vmem>>, %arg4: memref<1xf32, #tpu.memory_space<smem>>, %arg5: memref<1x128xf32, #tpu.memory_space<vmem>>) attributes {dimension_semantics = [#tpu.dimension_semantics<parallel>], iteration_bounds = array<i64: 1>, scalar_prefetch = 0 : i64, scratch_operands = 0 : i64, tpu.core_type = #tpu.core_type<tc>, window_params = [{transform_indices = @transform_0, window_bounds = array<i64: 128, 192>}, {pipeline_mode = #tpu.pipeline_mode<synchronous>, transform_indices = @transform_1, window_bounds = array<i64: 192, 384>}, {pipeline_mode = #tpu.pipeline_mode<synchronous>, transform_indices = @transform_2, window_bounds = array<i64: 2, 384>}, {transform_indices = @transform_3, window_bounds = array<i64: 1>}, {transform_indices = @transform_4, window_bounds = array<i64: 1, 128>}]} {
    %c0 = arith.constant 0 : index
    %c0_0 = arith.constant 0 : index
    %0 = vector.load %arg1[%c0, %c0_0] : memref<128x192xbf16, #tpu.memory_space<vmem>>, vector<128x192xbf16>
    %c0_1 = arith.constant 0 : index
    %c0_2 = arith.constant 0 : index
    %1 = vector.load %arg2[%c0_1, %c0_2] : memref<192x384xbf16, #tpu.memory_space<vmem>>, vector<192x384xbf16>
    %cst = arith.constant dense<0.000000e+00> : vector<128x384xf32>
    %2 = tpu.matmul %0, %1, %cst {dimension_numbers = #tpu.dot_dimension_numbers<[1], [0], [0], [1], [0, 0, 1, 1], [], []>} : vector<128x192xbf16>, vector<192x384xbf16>, vector<128x384xf32> -> vector<128x384xf32>
    %c0_3 = arith.constant 0 : index
    %c0_4 = arith.constant 0 : index
    %3 = vector.load %arg3[%c0_3, %c0_4] : memref<2x384xf32, #tpu.memory_space<vmem>>, vector<1x384xf32>
    %4 = vector.broadcast %3 : vector<1x384xf32> to vector<128x384xf32>
    %5 = arith.addf %2, %4 : vector<128x384xf32>
    %cst_5 = arith.constant 0.000000e+00 : f32
    %6 = vector.broadcast %cst_5 : f32 to vector<128x384xf32>
    %7 = arith.maximumf %5, %6 : vector<128x384xf32>
    %c1 = arith.constant 1 : index
    %c0_6 = arith.constant 0 : index
    %8 = vector.load %arg3[%c1, %c0_6] : memref<2x384xf32, #tpu.memory_space<vmem>>, vector<1x384xf32>
    %cst_7 = arith.constant dense<0.000000e+00> : vector<1x128xf32>
    %9 = tpu.matmul %8, %7, %cst_7 {dimension_numbers = #tpu.dot_dimension_numbers<[1], [1], [0], [0], [0, 0, 1, 0], [], []>} : vector<1x384xf32>, vector<128x384xf32>, vector<1x128xf32> -> vector<1x128xf32>
    %c0_8 = arith.constant 0 : index
    %10 = memref.load %arg4[%c0_8] : memref<1xf32, #tpu.memory_space<smem>>
    %11 = vector.broadcast %10 : f32 to vector<1x128xf32>
    %12 = arith.addf %9, %11 : vector<1x128xf32>
    %13 = arith.negf %12 : vector<1x128xf32>
    %14 = math.exp %13 : vector<1x128xf32>
    %cst_9 = arith.constant 1.000000e+00 : f32
    %15 = vector.broadcast %cst_9 : f32 to vector<1x128xf32>
    %16 = arith.addf %15, %14 : vector<1x128xf32>
    %17 = arith.divf %15, %16 : vector<1x128xf32>
    %c0_10 = arith.constant 0 : index
    %c0_11 = arith.constant 0 : index
    %18 = vector.load %arg5[%c0_10, %c0_11] : memref<1x128xf32, #tpu.memory_space<vmem>>, vector<1x128xf32>
    tpu.vector_store %arg5[%c0_10, %c0_11], %17 {strides = array<i32>} : memref<1x128xf32, #tpu.memory_space<vmem>>, vector<1x128xf32>,
    return
  }
  func.func @transform_0(%arg0: i32) -> (i32, i32) {
    %c0_i32 = arith.constant 0 : i32
    %c0_i32_0 = arith.constant 0 : i32
    return %arg0, %c0_i32 : i32, i32
  }
  func.func @transform_1(%arg0: i32) -> (i32, i32) {
    %c0_i32 = arith.constant 0 : i32
    %c0_i32_0 = arith.constant 0 : i32
    %c0_i32_1 = arith.constant 0 : i32
    return %c0_i32, %c0_i32_0 : i32, i32
  }
  func.func @transform_2(%arg0: i32) -> (i32, i32) {
    %c0_i32 = arith.constant 0 : i32
    %c0_i32_0 = arith.constant 0 : i32
    %c0_i32_1 = arith.constant 0 : i32
    return %c0_i32, %c0_i32_0 : i32, i32
  }
  func.func @transform_3(%arg0: i32) -> i32 {
    %c0_i32 = arith.constant 0 : i32
    %c0_i32_0 = arith.constant 0 : i32
    return %c0_i32 : i32
  }
  func.func @transform_4(%arg0: i32) -> (i32, i32) {
    %c0_i32 = arith.constant 0 : i32
    %c0_i32_0 = arith.constant 0 : i32
    return %arg0, %c0_i32 : i32, i32
  }
}

</mosaic_0001>

<bundles_post_ra>
// kernel: mh_safety_forward.1
= control target key start
LH: loop header
LB: loop body
LE: loop exit
PB: predicated region body
PF: predicated region fallthrough
CT: control target
= control target key end

     0   :  { %v1078_v1 = vmov 0   ;;  %vm364_vm0 = vcmask 523264   ;;  %v1079_v53 = vmov 0.0|0.0   ;;  %v85_v54 = vlaneseq  ;;  %s1383_s1 = inlined_call_operand.vmem [shape: bf16[192,384], index: 1, kind: input, shape index: {}]   ;;  %s1384_s0 = inlined_call_operand.vmem [shape: bf16[128,192], index: 0, kind: input, shape index: {}]   ;;  %s1385_s2 = inlined_call_operand.vmem [shape: f32[2,384], index: 2, kind: input, shape index: {}]   ;;  %s1386_s3 = inlined_call_operand.<no memory space> [shape: f32[1], index: 3, kind: input, shape index: {}]   ;;  %s1387_s4 = inlined_call_operand.vmem [shape: f32[1,128], index: 4, kind: output, shape index: {}]  }
   0x1   :  { %v1002_v0 = vld [vmem:[%s1383_s1 + $0x4] ss:$12 sps:$4 sm:$0xff]   ;;  %502 = vmatprep.subr.bf16.mxu1 %v1078_v1  ;;  %v1004_v2 = vld [vmem:[%s1383_s1] ss:$12 sps:$4 sm:$0xff]   ;;  %v1005_v3 = vld [vmem:[%s1383_s1 + $0x8] ss:$12 sps:$4 sm:$0xff]  }
   0x2   :  { %389 = vmatprep.subr.bf16.mxu0 %v1002_v0  ;;  %v1006_v4 = vld [vmem:[%s1383_s1 + $0x1c] ss:$12 sps:$4 sm:$0xff]   ;;  %v1008_v5 = vld [vmem:[%s1383_s1 + $0x18] ss:$12 sps:$4 sm:$0xff]   ;;  %503 = vmatpush1.bf16.msra.mxu1 %v1005_v3  ;;  %v1009_v6 = vld [vmem:[%s1383_s1 + $0x20] ss:$12 sps:$4 sm:$0xff]  }
   0x3   :  { %390 = vmatpush1.bf16.msra.mxu0 %v1004_v2  ;;  %504 = vmatprep.subr.bf16.mxu1 %v1078_v1  ;;  %v1010_v7 = vld [vmem:[%s1383_s1 + $0x34] ss:$12 sps:$4 sm:$0xff]   ;;  %v1012_v8 = vld [vmem:[%s1383_s1 + $0x30] ss:$12 sps:$4 sm:$0xff]   ;;  %v1013_v9 = vld [vmem:[%s1383_s1 + $0x38] ss:$12 sps:$4 sm:$0xff]  }
   0x4   :  { %391 = vmatprep.subr.bf16.mxu0 %v1006_v4  ;;  %v1014_v10 = vld [vmem:[%s1383_s1 + $0x4c] ss:$12 sps:$4 sm:$0xff]   ;;  %v1016_v11 = vld [vmem:[%s1383_s1 + $0x48] ss:$12 sps:$4 sm:$0xff]   ;;  %v1017_v12 = vld [vmem:[%s1383_s1 + $0x50] ss:$12 sps:$4 sm:$0xff]  }
   0x5   :  { %v1018_v13 = vld [vmem:[%s1383_s1 + $0x64] ss:$12 sps:$4 sm:$0xff]   ;;  %v1020_v14 = vld [vmem:[%s1383_s1 + $0x60] ss:$12 sps:$4 sm:$0xff]   ;;  %v1021_v15 = vld [vmem:[%s1383_s1 + $0x68] ss:$12 sps:$4 sm:$0xff]  }
   0x6   :  { %505 = vmatpush1.bf16.msra.mxu1 %v1009_v6  ;;  %v1022_v16 = vld [vmem:[%s1383_s1 + $0x7c] ss:$12 sps:$4 sm:$0xff]   ;;  %v1024_v17 = vld [vmem:[%s1383_s1 + $0x78] ss:$12 sps:$4 sm:$0xff]   ;;  %v1025_v18 = vld [vmem:[%s1383_s1 + $0x80] ss:$12 sps:$4 sm:$0xff]  }
   0x7   :  { %392 = vmatpush1.bf16.msra.mxu0 %v1008_v5  ;;  %506 = vmatprep.subr.bf16.mxu1 %v1078_v1  ;;  %v1026_v19 = vld [vmem:[%s1383_s1 + $0x94] ss:$12 sps:$4 sm:$0xff]   ;;  %v1028_v20 = vld [vmem:[%s1383_s1 + $0x90] ss:$12 sps:$4 sm:$0xff]   ;;  %v1029_v21 = vld [vmem:[%s1383_s1 + $0x98] ss:$12 sps:$4 sm:$0xff]  }
   0x8   :  { %393 = vmatprep.subr.bf16.mxu0 %v1010_v7  ;;  %v1030_v22 = vld [vmem:[%s1383_s1 + $0xac] ss:$12 sps:$4 sm:$0xff]   ;;  %v1032_v23 = vld [vmem:[%s1383_s1 + $0xa8] ss:$12 sps:$4 sm:$0xff]   ;;  %v1033_v24 = vld [vmem:[%s1383_s1 + $0xb0] ss:$12 sps:$4 sm:$0xff]  }
   0x9   :  { %v1034_v25 = vld [vmem:[%s1383_s1 + $0xc4] ss:$12 sps:$4 sm:$0xff]   ;;  %v1036_v27 = vld [vmem:[%s1383_s1 + $0xc0] ss:$12 sps:$4 sm:$0xff]   ;;  %v1037_v28 = vld [vmem:[%s1383_s1 + $0xc8] ss:$12 sps:$4 sm:$0xff]  }
   0xa   :  { %507 = vmatpush1.bf16.msra.mxu1 %v1013_v9  ;;  %v1052_v26 = vld [vmem:[%s1384_s0 + $0x4] ss:$8 sps:$4 sm:$0xff]   ;;  %v1038_v29 = vld [vmem:[%s1383_s1 + $0xdc] ss:$12 sps:$4 sm:$0xff]   ;;  %v1042_v32 = vld [vmem:[%s1383_s1 + $0xf4] ss:$12 sps:$4 sm:$0xff]  }
   0xb   :  { %394 = vmatpush1.bf16.msra.mxu0 %v1012_v8  ;;  %508 = vmatprep.subr.bf16.mxu1 %v1078_v1  ;;  %v1040_v30 = vld [vmem:[%s1383_s1 + $0xd8] ss:$12 sps:$4 sm:$0xff]   ;;  %v1041_v31 = vld [vmem:[%s1383_s1 + $0xe0] ss:$12 sps:$4 sm:$0xff]   ;;  %v1044_v33 = vld [vmem:[%s1383_s1 + $0xf0] ss:$12 sps:$4 sm:$0xff]  }
   0xc   :  { %395 = vmatprep.subr.bf16.mxu0 %v1014_v10  ;;  %870 = vmatprep.mubr.msk.bf16.mxu0 %vm364_vm0, %v1052_v26  ;;  %v1045_v34 = vld [vmem:[%s1383_s1 + $0xf8] ss:$12 sps:$4 sm:$0xff]   ;;  %v1048_v36 = vld [vmem:[%s1383_s1 + $0x108] ss:$12 sps:$4 sm:$0xff]   ;;  %v1049_v37 = vld [vmem:[%s1383_s1 + $0x110] ss:$12 sps:$4 sm:$0xff]  }
   0xd   :  { %878 = vmatprep.mubr.msk.bf16.mxu1 %vm364_vm0, %v1052_v26  ;;  %v1046_v35 = vld [vmem:[%s1383_s1 + $0x10c] ss:$12 sps:$4 sm:$0xff]   ;;  %v1050_v38 = vld [vmem:[%s1384_s0] ss:$8 sps:$4 sm:$0xff]   ;;  %v1053_v39 = vld [vmem:[%s1384_s0 + $0x14] ss:$8 sps:$4 sm:$0xff]  }
   0xe   :  { %509 = vmatpush1.bf16.msra.mxu1 %v1017_v12  ;;  %v1055_v40 = vld [vmem:[%s1384_s0 + $0x10] ss:$8 sps:$4 sm:$0xff]   ;;  %v1056_v41 = vld [vmem:[%s1384_s0 + $0x24] ss:$8 sps:$4 sm:$0xff]   ;;  %v1058_v42 = vld [vmem:[%s1384_s0 + $0x20] ss:$8 sps:$4 sm:$0xff]  }
   0xf   :  { %396 = vmatpush1.bf16.msra.mxu0 %v1016_v11  ;;  %510 = vmatprep.subr.bf16.mxu1 %v1078_v1  ;;  %v1059_v43 = vld [vmem:[%s1384_s0 + $0x34] ss:$8 sps:$4 sm:$0xff]   ;;  %v1061_v44 = vld [vmem:[%s1384_s0 + $0x30] ss:$8 sps:$4 sm:$0xff]   ;;  %v1062_v45 = vld [vmem:[%s1384_s0 + $0x44] ss:$8 sps:$4 sm:$0xff]  }
  0x10   :  { %397 = vmatprep.subr.bf16.mxu0 %v1018_v13  ;;  %v1064_v46 = vld [vmem:[%s1384_s0 + $0x40] ss:$8 sps:$4 sm:$0xff]   ;;  %v1065_v47 = vld [vmem:[%s1384_s0 + $0x54] ss:$8 sps:$4 sm:$0xff]   ;;  %v1067_v48 = vld [vmem:[%s1384_s0 + $0x50] ss:$8 sps:$4 sm:$0xff]  }
  0x11   :  { %v1068_v49 = vld [vmem:[%s1384_s0 + $0x64] ss:$8 sps:$4 sm:$0xff]   ;;  %v1070_v50 = vld [vmem:[%s1384_s0 + $0x60] ss:$8 sps:$4 sm:$0xff]   ;;  %v1071_v51 = vld [vmem:[%s1384_s0 + $0x74] ss:$8 sps:$4 sm:$0xff]  }
  0x12   :  { %511 = vmatpush1.bf16.msra.mxu1 %v1021_v15  ;;  %v1073_v52 = vld [vmem:[%s1384_s0 + $0x70] ss:$8 sps:$4 sm:$0xff]   ;;  %v1292_v55 = vshrl.u32 %v85_v54, 7  ;;  %v1298_v57 = vld [vmem:[%s1385_s2 + $0x1] ss:$2 sm:$0x7] }
  0x13   :  { %398 = vmatpush1.bf16.msra.mxu0 %v1020_v14  ;;  %512 = vmatprep.subr.bf16.mxu1 %v1078_v1  ;;  %vm1080_vm1 = vmmov 0   ;;  %v1081_v59 = vmov 0.0   ;;  %v83_v61 = vld [vmem:[%s1385_s2] ss:$2 sm:$0x7] }
  0x14   :  { %399 = vmatprep.subr.bf16.mxu0 %v1022_v16  ;;  %v91_v56 = vsub.s32 1, %v1292_v55  ;;  %v87_v60 = vsub.s32 0, %v1292_v55  ;;  %v95_v62 = vsub.s32 2, %v1292_v55 }
  0x16   :  { %513 = vmatpush1.bf16.msra.mxu1 %v1025_v18  ;;  %v659_v58 = vrot.slane %v1298_v57, %v91_v56  ;;  %v1308_v63 = vrot.slane %v83_v61, %v87_v60  ;;  %v1310_v0 = vrot.slane %v83_v61, %v91_v56 }
  0x17   :  { %400 = vmatpush1.bf16.msra.mxu0 %v1024_v17  ;;  %514 = vmatprep.subr.bf16.mxu1 %v1078_v1 }
  0x18   :  { %401 = vmatprep.subr.bf16.mxu0 %v1026_v19 }
  0x1a   :  { %515 = vmatpush1.bf16.msra.mxu1 %v1029_v21 }
  0x1b   :  { %402 = vmatpush1.bf16.msra.mxu0 %v1028_v20  ;;  %516 = vmatprep.subr.bf16.mxu1 %v1078_v1 }
  0x1c   :  { %403 = vmatprep.subr.bf16.mxu0 %v1030_v22 }
  0x1e   :  { %517 = vmatpush1.bf16.msra.mxu1 %v1033_v24 }
  0x1f   :  { %404 = vmatpush1.bf16.msra.mxu0 %v1032_v23  ;;  %518 = vmatprep.subr.bf16.mxu1 %v1078_v1 }
  0x20   :  { %405 = vmatprep.subr.bf16.mxu0 %v1034_v25 }
  0x22   :  { %519 = vmatpush1.bf16.msra.mxu1 %v1037_v28 }
  0x23   :  { %406 = vmatpush1.bf16.msra.mxu0 %v1036_v27  ;;  %520 = vmatprep.subr.bf16.mxu1 %v1078_v1 }
  0x24   :  { %407 = vmatprep.subr.bf16.mxu0 %v1038_v29 }
  0x26   :  { %521 = vmatpush1.bf16.msra.mxu1 %v1041_v31 }
  0x27   :  { %408 = vmatpush1.bf16.msra.mxu0 %v1040_v30  ;;  %522 = vmatprep.subr.bf16.mxu1 %v1078_v1 }
  0x28   :  { %409 = vmatprep.subr.bf16.mxu0 %v1042_v32 }
  0x2a   :  { %523 = vmatpush1.bf16.msra.mxu1 %v1045_v34 }
  0x2b   :  { %410 = vmatpush1.bf16.msra.mxu0 %v1044_v33  ;;  %524 = vmatprep.subr.bf16.mxu1 %v1078_v1  ;;  %v1314_v1 = vrot.slane %v83_v61, %v95_v62 }
  0x2c   :  { %411 = vmatprep.subr.bf16.mxu0 %v1046_v35 }
  0x2e   :  { %525 = vmatpush1.bf16.msra.mxu1 %v1049_v37 }
  0x2f   :  { %412 = vmatpush1.bf16.msra.mxu0 %v1048_v36 }
  0x30   :  { %972 = vmatprep.subr.bf16.mxu0 %v1079_v53 }
  0x31   :  { %535 = vmatmul.mubr.bf16.vlgmr.msra.gmra.mrb[0].mxu1 %v1050_v38 }
  0x32   :  { %422 = vmatmul.mubr.bf16.vlgmr.msra.gmra.mrb[0].mxu0 %v1050_v38  ;;  %879 = vmatprep.mubr.msk.bf16.mxu1 %vm364_vm0, %v1053_v39 }
  0x33   :  { %871 = vmatprep.mubr.msk.bf16.mxu0 %vm364_vm0, %v1053_v39 }
  0x39   :  { %543 = vmatmul.mubr.bf16.gmra.mrb[4].mxu1 %v1055_v40 }
  0x3a   :  { %432 = vmatmul.mubr.bf16.gmra.mrb[4].mxu0 %v1055_v40  ;;  %880 = vmatprep.mubr.msk.bf16.mxu1 %vm364_vm0, %v1056_v41 }
  0x3b   :  { %872 = vmatprep.mubr.msk.bf16.mxu0 %vm364_vm0, %v1056_v41 }
  0x41   :  { %551 = vmatmul.mubr.bf16.gmra.mrb[8].mxu1 %v1058_v42 }
  0x42   :  { %442 = vmatmul.mubr.bf16.gmra.mrb[8].mxu0 %v1058_v42  ;;  %881 = vmatprep.mubr.msk.bf16.mxu1 %vm364_vm0, %v1059_v43 }
  0x43   :  { %873 = vmatprep.mubr.msk.bf16.mxu0 %vm364_vm0, %v1059_v43 }
  0x49   :  { %559 = vmatmul.mubr.bf16.gmra.mrb[12].mxu1 %v1061_v44 }
  0x4a   :  { %452 = vmatmul.mubr.bf16.gmra.mrb[12].mxu0 %v1061_v44  ;;  %882 = vmatprep.mubr.msk.bf16.mxu1 %vm364_vm0, %v1062_v45 }
  0x4b   :  { %874 = vmatprep.mubr.msk.bf16.mxu0 %vm364_vm0, %v1062_v45 }
  0x51   :  { %567 = vmatmul.mubr.bf16.gmra.mrb[16].mxu1 %v1064_v46 }
  0x52   :  { %462 = vmatmul.mubr.bf16.gmra.mrb[16].mxu0 %v1064_v46  ;;  %883 = vmatprep.mubr.msk.bf16.mxu1 %vm364_vm0, %v1065_v47 }
  0x53   :  { %875 = vmatprep.mubr.msk.bf16.mxu0 %vm364_vm0, %v1065_v47 }
  0x59   :  { %575 = vmatmul.mubr.bf16.gmra.mrb[20].mxu1 %v1067_v48 }
  0x5a   :  { %472 = vmatmul.mubr.bf16.gmra.mrb[20].mxu0 %v1067_v48  ;;  %884 = vmatprep.mubr.msk.bf16.mxu1 %vm364_vm0, %v1068_v49 }
  0x5b   :  { %876 = vmatprep.mubr.msk.bf16.mxu0 %vm364_vm0, %v1068_v49 }
  0x61   :  { %583 = vmatmul.mubr.bf16.gmra.mrb[24].mxu1 %v1070_v50 }
  0x62   :  { %482 = vmatmul.mubr.bf16.gmra.mrb[24].mxu0 %v1070_v50  ;;  %885 = vmatprep.mubr.msk.bf16.mxu1 %vm364_vm0, %v1071_v51 }
  0x63   :  { %877 = vmatprep.mubr.msk.bf16.mxu0 %vm364_vm0, %v1071_v51 }
  0x69   :  { %591 = vmatmul.mubr.bf16.gmra.mrb[28].mxu1 %v1073_v52 }
  0x6a   :  { %492 = vmatmul.mubr.bf16.gmra.mrb[28].mxu0 %v1073_v52  ;;  %731 = vmatprep.mubr.f32.mxu1 %v659_v58 }
  0x6b   :  { %937 = vmatprep.mubr.msk.f32.mxu0 %vm1080_vm1, %v1081_v59 }
 0x104   :  { %v536_v5 = vpop.f32.mrb[0].mxu1 }
 0x105   :  { %v423_v2 = vpop.f32.mrb[0].mxu0  ;;  %v537_v7 = vadd.f32 %v536_v5, %v1314_v1  ;;  %v538_v9 = vpop.f32.mrb[1].mxu1 }
 0x106   :  { %v424_v3 = vadd.f32 %v423_v2, %v1308_v63  ;;  %v425_v4 = vpop.f32.mrb[1].mxu0  ;;  %v539_v12 = vpop.f32.mrb[2].mxu1 }
 0x107   :  { %v426_v6 = vadd.f32 %v425_v4, %v1310_v0  ;;  %v427_v8 = vpop.f32.mrb[2].mxu0  ;;  %v601_v13 = vmax.f32 %v537_v7, 0.0  ;;  %v540_v15 = vadd.f32 %v539_v12, %v1314_v1  ;;  %v541_v16 = vpop.f32.mrb[3].mxu1 }
 0x108   :  { %v428_v10 = vadd.f32 %v427_v8, %v1308_v63  ;;  %v429_v11 = vpop.f32.mrb[3].mxu0  ;;  %v599_v17 = vmax.f32 %v424_v3, 0.0 }
 0x109   :  { %v430_v14 = vadd.f32 %v429_v11, %v1310_v0  ;;  %v600_v19 = vmax.f32 %v426_v6, 0.0  ;;  %v604_v21 = vmax.f32 %v540_v15, 0.0 }
 0x10a   :  { %v602_v18 = vmax.f32 %v428_v10, 0.0 }
 0x10b   :  { %v603_v20 = vmax.f32 %v430_v14, 0.0  ;;  %v973_v24 = vpack.c.bf16 %v604_v21, %v601_v13 }
 0x10c   :  { %v942_v22 = vpack.c.bf16 %v602_v18, %v599_v17  ;;  %v544_v28 = vpop.f32.mrb[4].mxu1 }
 0x10d   :  { %v940_v23 = vpack.c.bf16 %v603_v20, %v600_v19  ;;  %v433_v25 = vpop.f32.mrb[4].mxu0  ;;  %v545_v30 = vadd.f32 %v544_v28, %v1314_v1  ;;  %v546_v32 = vpop.f32.mrb[5].mxu1  ;;  %974 = vmatpush3.bf16.xpose.msra.mxu0 %v973_v24 }
 0x10e   :  { %v434_v26 = vadd.f32 %v433_v25, %v1308_v63  ;;  %v435_v27 = vpop.f32.mrb[5].mxu0  ;;  %v547_v35 = vpop.f32.mrb[6].mxu1  ;;  %975 = vmatprep.subr.bf16.mxu0 %v1079_v53 }
 0x10f   :  { %v436_v29 = vadd.f32 %v435_v27, %v1310_v0  ;;  %v437_v31 = vpop.f32.mrb[6].mxu0  ;;  %941 = vmatprep.subr.bf16.mxu1 %v940_v23  ;;  %v607_v36 = vmax.f32 %v545_v30, 0.0  ;;  %v548_v38 = vadd.f32 %v547_v35, %v1314_v1  ;;  %v549_v39 = vpop.f32.mrb[7].mxu1 }
 0x110   :  { %v438_v33 = vadd.f32 %v437_v31, %v1308_v63  ;;  %v439_v34 = vpop.f32.mrb[7].mxu0  ;;  %943 = vmatpush1.bf16.xpose.msra.mxu1 %v942_v22  ;;  %v605_v40 = vmax.f32 %v434_v26, 0.0 }
 0x111   :  { %v440_v37 = vadd.f32 %v439_v34, %v1310_v0  ;;  %v606_v42 = vmax.f32 %v436_v29, 0.0  ;;  %v610_v44 = vmax.f32 %v548_v38, 0.0 }
 0x112   :  { %v608_v41 = vmax.f32 %v438_v33, 0.0 }
 0x113   :  { %v609_v43 = vmax.f32 %v440_v37, 0.0  ;;  %v976_v47 = vpack.c.bf16 %v610_v44, %v607_v36 }
 0x114   :  { %v946_v45 = vpack.c.bf16 %v608_v41, %v605_v40  ;;  %v552_v51 = vpop.f32.mrb[8].mxu1 }
 0x115   :  { %v944_v46 = vpack.c.bf16 %v609_v43, %v606_v42  ;;  %v443_v48 = vpop.f32.mrb[8].mxu0  ;;  %v553_v54 = vadd.f32 %v552_v51, %v1314_v1  ;;  %v554_v58 = vpop.f32.mrb[9].mxu1  ;;  %977 = vmatpush3.bf16.xpose.msra.mxu0 %v976_v47 }
 0x116   :  { %v444_v49 = vadd.f32 %v443_v48, %v1308_v63  ;;  %v445_v50 = vpop.f32.mrb[9].mxu0  ;;  %v555_v2 = vpop.f32.mrb[10].mxu1  ;;  %978 = vmatprep.subr.bf16.mxu0 %v1079_v53 }
 0x117   :  { %v446_v52 = vadd.f32 %v445_v50, %v1310_v0  ;;  %v447_v56 = vpop.f32.mrb[10].mxu0  ;;  %945 = vmatprep.subr.bf16.mxu1 %v944_v46  ;;  %v613_v3 = vmax.f32 %v553_v54, 0.0  ;;  %v556_v5 = vadd.f32 %v555_v2, %v1314_v1  ;;  %v557_v6 = vpop.f32.mrb[11].mxu1 }
 0x118   :  { %v448_v59 = vadd.f32 %v447_v56, %v1308_v63  ;;  %v449_v61 = vpop.f32.mrb[11].mxu0  ;;  %947 = vmatpush1.bf16.xpose.msra.mxu1 %v946_v45  ;;  %v611_v7 = vmax.f32 %v444_v49, 0.0 }
 0x119   :  { %v450_v4 = vadd.f32 %v449_v61, %v1310_v0  ;;  %v612_v9 = vmax.f32 %v446_v52, 0.0  ;;  %v616_v11 = vmax.f32 %v556_v5, 0.0 }
 0x11a   :  { %v614_v8 = vmax.f32 %v448_v59, 0.0 }
 0x11b   :  { %v615_v10 = vmax.f32 %v450_v4, 0.0  ;;  %v979_v14 = vpack.c.bf16 %v616_v11, %v613_v3 }
 0x11c   :  { %v950_v12 = vpack.c.bf16 %v614_v8, %v611_v7  ;;  %v560_v18 = vpop.f32.mrb[12].mxu1 }
 0x11d   :  { %v948_v13 = vpack.c.bf16 %v615_v10, %v612_v9  ;;  %v453_v15 = vpop.f32.mrb[12].mxu0  ;;  %v561_v20 = vadd.f32 %v560_v18, %v1314_v1  ;;  %v562_v22 = vpop.f32.mrb[13].mxu1  ;;  %980 = vmatpush3.bf16.xpose.msra.mxu0 %v979_v14 }
 0x11e   :  { %v454_v16 = vadd.f32 %v453_v15, %v1308_v63  ;;  %v455_v17 = vpop.f32.mrb[13].mxu0  ;;  %v563_v25 = vpop.f32.mrb[14].mxu1  ;;  %981 = vmatprep.subr.bf16.mxu0 %v1079_v53 }
 0x11f   :  { %v456_v19 = vadd.f32 %v455_v17, %v1310_v0  ;;  %v457_v21 = vpop.f32.mrb[14].mxu0  ;;  %949 = vmatprep.subr.bf16.mxu1 %v948_v13  ;;  %v619_v26 = vmax.f32 %v561_v20, 0.0  ;;  %v564_v28 = vadd.f32 %v563_v25, %v1314_v1  ;;  %v565_v29 = vpop.f32.mrb[15].mxu1 }
 0x120   :  { %v458_v23 = vadd.f32 %v457_v21, %v1308_v63  ;;  %v459_v24 = vpop.f32.mrb[15].mxu0  ;;  %951 = vmatpush1.bf16.xpose.msra.mxu1 %v950_v12  ;;  %v617_v30 = vmax.f32 %v454_v16, 0.0 }
 0x121   :  { %v460_v27 = vadd.f32 %v459_v24, %v1310_v0  ;;  %v618_v32 = vmax.f32 %v456_v19, 0.0  ;;  %v622_v34 = vmax.f32 %v564_v28, 0.0 }
 0x122   :  { %v620_v31 = vmax.f32 %v458_v23, 0.0 }
 0x123   :  { %v621_v33 = vmax.f32 %v460_v27, 0.0  ;;  %v982_v37 = vpack.c.bf16 %v622_v34, %v619_v26 }
 0x124   :  { %v954_v35 = vpack.c.bf16 %v620_v31, %v617_v30  ;;  %v568_v41 = vpop.f32.mrb[16].mxu1 }
 0x125   :  { %v952_v36 = vpack.c.bf16 %v621_v33, %v618_v32  ;;  %v463_v38 = vpop.f32.mrb[16].mxu0  ;;  %v569_v43 = vadd.f32 %v568_v41, %v1314_v1  ;;  %v570_v45 = vpop.f32.mrb[17].mxu1  ;;  %983 = vmatpush3.bf16.xpose.msra.mxu0 %v982_v37 }
 0x126   :  { %v464_v39 = vadd.f32 %v463_v38, %v1308_v63  ;;  %v465_v40 = vpop.f32.mrb[17].mxu0  ;;  %v571_v48 = vpop.f32.mrb[18].mxu1  ;;  %984 = vmatprep.subr.bf16.mxu0 %v1079_v53 }
 0x127   :  { %v466_v42 = vadd.f32 %v465_v40, %v1310_v0  ;;  %v467_v44 = vpop.f32.mrb[18].mxu0  ;;  %953 = vmatprep.subr.bf16.mxu1 %v952_v36  ;;  %v625_v49 = vmax.f32 %v569_v43, 0.0  ;;  %v572_v51 = vadd.f32 %v571_v48, %v1314_v1  ;;  %v573_v52 = vpop.f32.mrb[19].mxu1 }
 0x128   :  { %v468_v46 = vadd.f32 %v467_v44, %v1308_v63  ;;  %v469_v47 = vpop.f32.mrb[19].mxu0  ;;  %955 = vmatpush1.bf16.xpose.msra.mxu1 %v954_v35  ;;  %v623_v54 = vmax.f32 %v464_v39, 0.0 }
 0x129   :  { %v470_v50 = vadd.f32 %v469_v47, %v1310_v0  ;;  %v624_v58 = vmax.f32 %v466_v42, 0.0  ;;  %v628_v61 = vmax.f32 %v572_v51, 0.0 }
 0x12a   :  { %v626_v56 = vmax.f32 %v468_v46, 0.0 }
 0x12b   :  { %v627_v59 = vmax.f32 %v470_v50, 0.0  ;;  %v985_v4 = vpack.c.bf16 %v628_v61, %v625_v49 }
 0x12c   :  { %v958_v2 = vpack.c.bf16 %v626_v56, %v623_v54  ;;  %v576_v8 = vpop.f32.mrb[20].mxu1 }
 0x12d   :  { %v956_v3 = vpack.c.bf16 %v627_v59, %v624_v58  ;;  %v473_v5 = vpop.f32.mrb[20].mxu0  ;;  %v577_v10 = vadd.f32 %v576_v8, %v1314_v1  ;;  %v578_v12 = vpop.f32.mrb[21].mxu1  ;;  %986 = vmatpush3.bf16.xpose.msra.mxu0 %v985_v4 }
 0x12e   :  { %v474_v6 = vadd.f32 %v473_v5, %v1308_v63  ;;  %v475_v7 = vpop.f32.mrb[21].mxu0  ;;  %v579_v15 = vpop.f32.mrb[22].mxu1  ;;  %987 = vmatprep.subr.bf16.mxu0 %v1079_v53 }
 0x12f   :  { %v476_v9 = vadd.f32 %v475_v7, %v1310_v0  ;;  %v477_v11 = vpop.f32.mrb[22].mxu0  ;;  %957 = vmatprep.subr.bf16.mxu1 %v956_v3  ;;  %v631_v16 = vmax.f32 %v577_v10, 0.0  ;;  %v580_v18 = vadd.f32 %v579_v15, %v1314_v1  ;;  %v581_v19 = vpop.f32.mrb[23].mxu1 }
 0x130   :  { %v478_v13 = vadd.f32 %v477_v11, %v1308_v63  ;;  %v479_v14 = vpop.f32.mrb[23].mxu0  ;;  %959 = vmatpush1.bf16.xpose.msra.mxu1 %v958_v2  ;;  %v629_v20 = vmax.f32 %v474_v6, 0.0 }
 0x131   :  { %v480_v17 = vadd.f32 %v479_v14, %v1310_v0  ;;  %v630_v22 = vmax.f32 %v476_v9, 0.0  ;;  %v634_v24 = vmax.f32 %v580_v18, 0.0 }
 0x132   :  { %v632_v21 = vmax.f32 %v478_v13, 0.0 }
 0x133   :  { %v633_v23 = vmax.f32 %v480_v17, 0.0  ;;  %v988_v27 = vpack.c.bf16 %v634_v24, %v631_v16 }
 0x134   :  { %v962_v25 = vpack.c.bf16 %v632_v21, %v629_v20  ;;  %v584_v31 = vpop.f32.mrb[24].mxu1 }
 0x135   :  { %v960_v26 = vpack.c.bf16 %v633_v23, %v630_v22  ;;  %v483_v28 = vpop.f32.mrb[24].mxu0  ;;  %v585_v33 = vadd.f32 %v584_v31, %v1314_v1  ;;  %v586_v35 = vpop.f32.mrb[25].mxu1  ;;  %989 = vmatpush3.bf16.xpose.msra.mxu0 %v988_v27 }
 0x136   :  { %v484_v29 = vadd.f32 %v483_v28, %v1308_v63  ;;  %v485_v30 = vpop.f32.mrb[25].mxu0  ;;  %v587_v38 = vpop.f32.mrb[26].mxu1  ;;  %990 = vmatprep.subr.bf16.mxu0 %v1079_v53 }
 0x137   :  { %v486_v32 = vadd.f32 %v485_v30, %v1310_v0  ;;  %v487_v34 = vpop.f32.mrb[26].mxu0  ;;  %961 = vmatprep.subr.bf16.mxu1 %v960_v26  ;;  %v637_v39 = vmax.f32 %v585_v33, 0.0  ;;  %v588_v41 = vadd.f32 %v587_v38, %v1314_v1  ;;  %v589_v42 = vpop.f32.mrb[27].mxu1 }
 0x138   :  { %v488_v36 = vadd.f32 %v487_v34, %v1308_v63  ;;  %v489_v37 = vpop.f32.mrb[27].mxu0  ;;  %963 = vmatpush1.bf16.xpose.msra.mxu1 %v962_v25  ;;  %v635_v43 = vmax.f32 %v484_v29, 0.0 }
 0x139   :  { %v490_v40 = vadd.f32 %v489_v37, %v1310_v0  ;;  %v636_v45 = vmax.f32 %v486_v32, 0.0  ;;  %v640_v47 = vmax.f32 %v588_v41, 0.0 }
 0x13a   :  { %v638_v44 = vmax.f32 %v488_v36, 0.0 }
 0x13b   :  { %v639_v46 = vmax.f32 %v490_v40, 0.0  ;;  %v991_v50 = vpack.c.bf16 %v640_v47, %v637_v39 }
 0x13c   :  { %v966_v48 = vpack.c.bf16 %v638_v44, %v635_v43  ;;  %v592_v56 = vpop.f32.mrb[28].mxu1 }
 0x13d   :  { %v964_v49 = vpack.c.bf16 %v639_v46, %v636_v45  ;;  %v493_v51 = vpop.f32.mrb[28].mxu0  ;;  %v593_v59 = vadd.f32 %v592_v56, %v1314_v1  ;;  %v594_v2 = vpop.f32.mrb[29].mxu1  ;;  %992 = vmatpush3.bf16.xpose.msra.mxu0 %v991_v50 }
 0x13e   :  { %v494_v52 = vadd.f32 %v493_v51, %v1308_v63  ;;  %v495_v54 = vpop.f32.mrb[29].mxu0  ;;  %v595_v5 = vpop.f32.mrb[30].mxu1  ;;  %993 = vmatprep.subr.bf16.mxu0 %v1079_v53  ;;  %v663_v53 = vrot.slane %v1298_v57, %v95_v62 }
 0x13f   :  { %v496_v58 = vadd.f32 %v495_v54, %v1310_v0  ;;  %v497_v61 = vpop.f32.mrb[30].mxu0  ;;  %965 = vmatprep.subr.bf16.mxu1 %v964_v49  ;;  %v643_v6 = vmax.f32 %v593_v59, 0.0  ;;  %v596_v8 = vadd.f32 %v595_v5, %v1314_v1  ;;  %v597_v9 = vpop.f32.mrb[31].mxu1 }
 0x140   :  { %v498_v3 = vadd.f32 %v497_v61, %v1308_v63  ;;  %v499_v4 = vpop.f32.mrb[31].mxu0  ;;  %967 = vmatpush1.bf16.xpose.msra.mxu1 %v966_v48  ;;  %v641_v10 = vmax.f32 %v494_v52, 0.0  ;;  %v655_v63 = vrot.slane %v1298_v57, %v87_v60 }
 0x141   :  { %v500_v7 = vadd.f32 %v499_v4, %v1310_v0  ;;  %v642_v12 = vmax.f32 %v496_v58, 0.0  ;;  %v646_v14 = vmax.f32 %v596_v8, 0.0  ;;  %v650_v0 = vstv %s1386_s3 }
 0x142   :  { %v644_v11 = vmax.f32 %v498_v3, 0.0 }
 0x143   :  { %v645_v13 = vmax.f32 %v500_v7, 0.0  ;;  %v994_v17 = vpack.c.bf16 %v646_v14, %v643_v6 }
 0x144   :  { %v970_v15 = vpack.c.bf16 %v644_v11, %v641_v10 }
 0x145   :  { %v968_v16 = vpack.c.bf16 %v645_v13, %v642_v12  ;;  %995 = vmatpush3.bf16.xpose.msra.mxu0 %v994_v17 }
 0x147   :  { %969 = vmatprep.subr.bf16.mxu1 %v968_v16 }
 0x148   :  { %971 = vmatpush1.bf16.xpose.msra.mxu1 %v970_v15 }
 0x14c   :  { %938 = vmatmul.mubr.f32.vlgmr.msra.gmra.mrb[32].mxu0 %v663_v53 }
 0x14f   :  { %732 = vmatmul.mubr.f32.vlgmr.msra.gmra.mrb[32].mxu1 %v655_v63 }
 0x21f   :  { %v803_v1 = vpop.f32.mrb[32].mxu0 }
 0x220   :  { %v939_v19 = vpop.f32.mrb[33].mxu0 }
 0x222   :  { %v733_v18 = vpop.f32.mrb[32].mxu1 }
 0x223   :  { %v734_v20 = vadd.f32 %v733_v18, %v650_v0  ;;  %v735_v21 = vpop.f32.mrb[33].mxu1 }
 0x225   :  { %v804_v22 = vadd.f32 %v803_v1, %v734_v20 }
 0x227   :  { %v887_v23 = vmul.f32 -1.442695, %v804_v22 }
 0x229   :  { %1074 = vpow2.f32 %v887_v23 }
 0x233   :  { %v1075_v24 = vpop.eup %1074 }
 0x234   :  { %v810_v62 = vadd.f32 1.0, %v1075_v24 }
 0x236   :  { %1076 = vrcp.f32 %v810_v62 }
 0x240   :  { %v1077_v55 = vpop.eup %1076 }
 0x241   :  { %813 = vst [vmem:[%s1387_s4] sm:$0x1] %v1077_v55 }

</bundles_post_ra>
